<compile_context>
chip_gen: v7x
topology: tpu7x:2x2x1
jax: 0.10.0
libtpu: 0.0.40
codegen_flags: <defaults>
</compile_context>

<pallas_src>
import jax
import jax.numpy as jnp
from jax.experimental import pallas as pl
from jax.experimental.pallas import tpu as pltpu


def _flatten_copy_kernel(x_ref, o_ref):
    # Flatten has no compute: a pure memory-bound tile copy.
    o_ref[...] = x_ref[...]


def _vmem_limit_bytes():
    """Per-generation scoped-VMEM limit (leaves headroom for the compiler)."""
    try:
        cap = int(pltpu.get_tpu_info().vmem_capacity_bytes)
    except Exception:
        cap = 64 * 1024 * 1024  # conservative: works on every generation
    # v7x (64 MiB physical) -> 48 MiB limit; v5e/v6e (128 MiB) -> 96 MiB limit.
    return min(96 * 1024 * 1024, (cap * 3) // 4)


def _tile_plan(B, N, itemsize, vmem_limit):
    """Pick (tb, tn): batch-rows and lane-columns per tile.

    Budget = vmem_limit / 5  (input + output, each double-buffered, + headroom).
    tb is a multiple of the dtype-packed sublane count (or equals B);
    tn is a multiple of 128 (or equals N), kept >= 512 lanes when split.
    """
    sublane = max(8, 32 // itemsize)          # 8 f32, 16 bf16, 32 int8/fp8
    tile_budget = max(vmem_limit // 5, sublane * 128 * itemsize)
    row_bytes = N * itemsize

    if row_bytes * sublane <= tile_budget:
        # Full rows fit: tile only along the batch.
        tn = N
        max_rows = max(sublane, ((tile_budget // row_bytes) // sublane) * sublane)
        tb = min(B, max_rows)
        if tb < B:
            tb = max(sublane, (tb // sublane) * sublane)
        elif B >= 2 * sublane:
            # Force >= 2 grid steps so v7x can shard across both TensorCores.
            half = -(-B // 2)
            tb = max(sublane, (-(-half // sublane)) * sublane)
    else:
        # Row too wide for one tile: add a lane-axis grid dimension.
        tb = min(B, sublane)
        tn = ((tile_budget // (tb * itemsize)) // 128) * 128
        tn = max(512, tn)
        tn = min(tn, N)
    return tb, tn


def flatten_forward(x, *, materialize=False, donate_input=False):
    """Pallas implementation of Flatten.forward: x -> (B, prod(rest)).

    materialize=False (default, fastest): metadata-only reshape, no kernel.
    materialize=True: run the Pallas tiled-copy kernel to produce a fresh
      (B, N) buffer.  donate_input=True additionally aliases the input buffer
      to the output (only safe if the caller never reuses x afterwards).
    """
    B = x.shape[0]
    N = 1
    for d in x.shape[1:]:
        N *= d

    # Metadata-only reshape (zero data movement for contiguous inputs).
    x2 = x.reshape(B, N)
    if not materialize or B == 0 or N == 0:
        return x2

    itemsize = jnp.dtype(x.dtype).itemsize
    vmem_limit = _vmem_limit_bytes()
    tb, tn = _tile_plan(B, N, itemsize, vmem_limit)
    grid = (pl.cdiv(B, tb), pl.cdiv(N, tn))

    cost = pl.CostEstimate(flops=0, transcendentals=0,
                           bytes_accessed=2 * B * N * itemsize)

    return pl.pallas_call(
        _flatten_copy_kernel,
        out_shape=jax.ShapeDtypeStruct((B, N), x.dtype),
        grid=grid,
        in_specs=[pl.BlockSpec((tb, tn), lambda i, j: (i, j))],
        out_specs=pl.BlockSpec((tb, tn), lambda i, j: (i, j)),
        compiler_params=pltpu.CompilerParams(
            dimension_semantics=("parallel", "parallel"),
            vmem_limit_bytes=vmem_limit),
        cost_estimate=cost,
        input_output_aliases={0: 0} if donate_input else {},
    )(x2)


if __name__ == "__main__":
    key = jax.random.PRNGKey(0)
    k1, k2 = jax.random.split(key)

    # Small shape consistent with the module: (batch=2, channels=4, 16, 16).
    x = jax.random.normal(k1, (2, 4, 16, 16), jnp.float32)
    ref = x.reshape(x.shape[0], -1)

    # Fast path: metadata-only (no kernel, no HBM traffic).
    out_fast = flatten_forward(x)
    jax.block_until_ready(out_fast)
    assert out_fast.shape == ref.shape, (out_fast.shape, ref.shape)
    assert jnp.array_equal(out_fast, ref), "flatten mismatch (metadata path)"

    # Materialized path: exercises the Pallas tiled-copy kernel (grid=(1,1)).
    out_mat = flatten_forward(x, materialize=True)
    jax.block_until_ready(out_mat)
    assert out_mat.shape == ref.shape, (out_mat.shape, ref.shape)
    assert jnp.array_equal(out_mat, ref), "flatten mismatch (kernel path)"

    # Larger case exercising a multi-step pipelined batch grid (tb=8, grid=(2,1)),
    # which also lets v7x shard the copy across both TensorCores.
    x_big = jax.random.normal(k2, (16, 3, 32, 32), jnp.float32)
    ref_big = x_big.reshape(x_big.shape[0], -1)
    out_big = flatten_forward(x_big, materialize=True)
    jax.block_until_ready(out_big)
    assert out_big.shape == ref_big.shape, (out_big.shape, ref_big.shape)
    assert jnp.array_equal(out_big, ref_big), "flatten mismatch (kernel path, big)"

    print("KERNEL_OK")
</pallas_src>

<mosaic_0001>
module attributes {stable_mosaic.version = 11 : i64} {
  func.func @_flatten_copy_kernel(%arg0: i32, %arg1: i32, %arg2: memref<2x1024xf32, #tpu.memory_space<vmem>>, %arg3: memref<2x1024xf32, #tpu.memory_space<vmem>>) attributes {dimension_semantics = [#tpu.dimension_semantics<parallel>, #tpu.dimension_semantics<parallel>], iteration_bounds = array<i64: 1, 1>, scalar_prefetch = 0 : i64, scratch_operands = 0 : i64, tpu.core_type = #tpu.core_type<tc>, window_params = [{transform_indices = @transform_0, window_bounds = array<i64: 2, 1024>}, {transform_indices = @transform_1, window_bounds = array<i64: 2, 1024>}]} {
    %c0 = arith.constant 0 : index
    %c0_0 = arith.constant 0 : index
    %0 = vector.load %arg2[%c0, %c0_0] : memref<2x1024xf32, #tpu.memory_space<vmem>>, vector<2x1024xf32>
    %c0_1 = arith.constant 0 : index
    %c0_2 = arith.constant 0 : index
    %1 = vector.load %arg3[%c0_1, %c0_2] : memref<2x1024xf32, #tpu.memory_space<vmem>>, vector<2x1024xf32>
    tpu.vector_store %arg3[%c0_1, %c0_2], %0 {strides = array<i32>} : memref<2x1024xf32, #tpu.memory_space<vmem>>, vector<2x1024xf32>,
    return
  }
  func.func @transform_0(%arg0: i32, %arg1: i32) -> (i32, i32) {
    %c0_i32 = arith.constant 0 : i32
    return %arg0, %arg1 : i32, i32
  }
  func.func @transform_1(%arg0: i32, %arg1: i32) -> (i32, i32) {
    %c0_i32 = arith.constant 0 : i32
    return %arg0, %arg1 : i32, i32
  }
}

</mosaic_0001>

<bundles_post_ra>
// kernel: tpu_custom_call.1
= control target key start
LH: loop header
LB: loop body
LE: loop exit
PB: predicated region body
PF: predicated region fallthrough
CT: control target
= control target key end

     0   :  { %6 = vsyncpa [#allocation3], 0  ;;  %s126_s0 = inlined_call_operand.hbm [shape: f32[2,1024], index: 0, kind: input, shape index: {}]   ;;  %s127_s1 = inlined_call_operand.hbm [shape: f32[2,1024], index: 1, kind: output, shape index: {}]  }
   0x1   :  { %7 = vsyncpa [#allocation4], 0  ;;  %s90_s6 = smov [#allocation2]   ;;  %s42_s10 = scalar_lea.hbm %s126_s0, 256 }
   0x2   :  { %s14_s7 = sshll.u32 %s90_s6, 4  ;;  %p43_p0 = scmp.ne.s32.totalorder %s126_s0, %s42_s10  ;;  %s15_s7 = int_to_ptr.vmem [resolvable:$true] %s14_s7 }
   0x3   :  { %p46_p1 = scmp.lt.u32.totalorder %s42_s10, %s126_s0 }
   0x5   :  { %p48_p2 = pnand %p46_p1, %p43_p0 }
   0x7   :  { %51 = shalt.err (!%p48_p2)
}
   0x8   :  { %s52_s15 = scalar_lea.vmem %s15_s7, 256  ;;  %p57_p4 = scmp.lt.s32.totalorder %s15_s7, %s15_s7 }
   0x9   :  { %p53_p3 = scmp.ne.s32.totalorder %s15_s7, %s52_s15  ;;  %p58_p5 = scmp.lt.s32.totalorder %s52_s15, %s52_s15 }
   0xb   :  { %p59_p6 = por %p58_p5, %p57_p4 }
   0xd   :  { %p60_p7 = pnand %p59_p6, %p53_p3 }
   0xf   :  { %63 = shalt.err (!%p60_p7)
}
  0x10   :  { %17 = dma.hbm_to_vmem [thread:$0]  %s126_s0, 256, %s15_s7, [#allocation3]  }
  0x11   :  { %86 = dma.done.wait [#allocation3], 256  }
  0x12   :  { %87 = vsyncadd [#allocation3], 4294967040  ;;  %s91_s18 = smov [#allocation5]   ;;  %v21_v0 = vld [vmem:[#allocation2] sm:$0xff]  ;;  %v22_v1 = vld [vmem:[#allocation2 + $0x8] sm:$0xff] }
  0x13   :  { %s31_s19 = sshll.u32 %s91_s18, 4  ;;  %23 = vst [vmem:[#allocation5] sm:$0xff] %v21_v0  ;;  %24 = vst [vmem:[#allocation5 + $0x8] sm:$0xff] %v22_v1  ;;  %s32_s19 = int_to_ptr.vmem [resolvable:$true] %s31_s19 }
  0x14   :  { %s64_s20 = scalar_lea.vmem %s32_s19, 256  ;;  %p69_p9 = scmp.lt.s32.totalorder %s32_s19, %s32_s19 }
  0x15   :  { %p65_p8 = scmp.ne.s32.totalorder %s32_s19, %s64_s20  ;;  %p70_p10 = scmp.lt.s32.totalorder %s64_s20, %s64_s20 }
  0x17   :  { %p71_p11 = por %p70_p10, %p69_p9 }
  0x19   :  { %p72_p12 = pnand %p71_p11, %p65_p8 }
  0x1b   :  { %75 = shalt.err (!%p72_p12)
}
  0x1c   :  { %s76_s0 = scalar_lea.hbm %s127_s1, 256 }
  0x1d   :  { %p77_p13 = scmp.ne.s32.totalorder %s127_s1, %s76_s0  ;;  %p80_p0 = scmp.lt.u32.totalorder %s76_s0, %s127_s1 }
  0x1f   :  { %p82_p1 = pnand %p80_p0, %p77_p13 }
  0x21   :  { %85 = shalt.err (!%p82_p1)
}
  0x22   :  { %34 = dma.vmem_to_hbm [thread:$0]  %s32_s19, 256, %s127_s1, [#allocation4]  }
  0x23   :  { %88 = dma.done.wait [#allocation4], 256  }
  0x24   :  { %89 = vsyncadd [#allocation4], 4294967040 }
  0x25   :  { %38 = vsyncpa [#allocation3], 1 }
  0x26   :  { %39 = vsyncpa [#allocation4], 1 }

</bundles_post_ra>
